<compile_context>
chip_gen: v7x
topology: tpu7x:2x2x1
jax: 0.10.0
libtpu: 0.0.40
codegen_flags: <defaults>
</compile_context>

<pallas_src>
import functools

import jax
import jax.numpy as jnp
from jax import lax
from jax.experimental import pallas as pl
from jax.experimental.pallas import tpu as pltpu

BN_EPS = 1e-5
_NEG = -3.0e38  # post-activation "-inf" sentinel for pool padding


# ---------------------------------------------------------------------------
# Pass 1: circular Conv1d(k=3) + per-batch per-channel sum / sumsq (BN stats)
# ---------------------------------------------------------------------------
def conv_stats_kernel(x_ref, w_ref, y_ref, sum_ref, sq_ref):
    # x_ref:   [1, L, C]     bf16  one batch element (channels on the lane axis)
    # w_ref:   [3, C, C]     bf16  w_ref[k, ci, co] = conv_weight[co, ci, k]
    # y_ref:   [1, L_pad, C] bf16  pre-BN conv output (L_pad = 2*ceil(L/2))
    # sum_ref: [1, 1, C]     f32   per-batch partial sum   (reduced over B in glue)
    # sq_ref:  [1, 1, C]     f32   per-batch partial sumsq (reduced over B in glue)
    L = x_ref.shape[1]
    L_pad = y_ref.shape[1]
    x = x_ref[0]                                                   # [L, C] bf16

    # Circular k=3 taps from shifted bf16 views (wrap never crosses a batch boundary).
    x_m1 = jnp.concatenate([x[L - 1:, :], x[:L - 1, :]], axis=0)   # x[(l-1) mod L]
    x_p1 = jnp.concatenate([x[1:, :], x[:1, :]], axis=0)           # x[(l+1) mod L]

    # Conv1d(C->C, k=3) as three channel-dim MXU matmuls; bf16 operands, f32 accum.
    y = (jnp.dot(x_m1, w_ref[0], preferred_element_type=jnp.float32)
         + jnp.dot(x, w_ref[1], preferred_element_type=jnp.float32)
         + jnp.dot(x_p1, w_ref[2], preferred_element_type=jnp.float32))
    # Conv bias intentionally omitted: exactly cancelled by the train-mode BN mean.

    # BN statistics from the f32 accumulator, BEFORE the bf16 down-cast.
    sum_ref[0] = jnp.sum(y, axis=0, keepdims=True)
    sq_ref[0] = jnp.sum(y * y, axis=0, keepdims=True)

    y_bf = y.astype(y_ref.dtype)
    if L_pad > L:   # odd L: one zero pad row; masked (set to -inf) in pass 2
        y_bf = jnp.concatenate(
            [y_bf, jnp.zeros((L_pad - L, y_bf.shape[1]), y_ref.dtype)], axis=0)
    y_ref[0] = y_bf


# ---------------------------------------------------------------------------
# Pass 2: folded BatchNorm affine + ELU + MaxPool1d(kernel=3, stride=2, padding=1)
# ---------------------------------------------------------------------------
def bn_elu_pool_kernel(y_ref, scale_ref, shift_ref, o_ref, *, odd_length):
    # y_ref:   [1, L_out, 2C] bf16  row j = [ y[2j] | y[2j+1] ]  (pair-merged layout)
    # scale_ref / shift_ref: [1, 2C] f32 folded BN affine, tiled twice along lanes
    # o_ref:   [1, L_out, C]  f32
    L_out = y_ref.shape[1]
    C = y_ref.shape[2] // 2

    # Fused BN affine + ELU(alpha=1), all in f32 (v5e has no bf16 VPU/EUP).
    a = y_ref[0].astype(jnp.float32) * scale_ref[...] + shift_ref[...]
    a = jnp.where(a > 0, a, jnp.exp(jnp.minimum(a, 0.0)) - 1.0)

    # MaxPool1d(k=3, s=2, pad=1): out[j] = max(y[2j-1], y[2j], y[2j+1]); pads are -inf.
    center = a[:, :C]                      # y[2j]    (lane slice)
    right = a[:, C:]                       # y[2j+1]  (lane slice)
    if odd_length:                         # last "right" element is a pad row -> -inf
        row = lax.broadcasted_iota(jnp.int32, (L_out, C), 0)
        right = jnp.where(row == L_out - 1, _NEG, right)
    neg_row = jnp.full((1, C), _NEG, jnp.float32)
    left = jnp.concatenate([neg_row, right[:L_out - 1, :]], axis=0)   # y[2j-1]

    o_ref[0] = jnp.maximum(jnp.maximum(center, right), left).astype(o_ref.dtype)


# ---------------------------------------------------------------------------
# Wrapper
# ---------------------------------------------------------------------------
def _compiler_params(dimension_semantics):
    kwargs = dict(dimension_semantics=dimension_semantics)
    try:
        phys = pltpu.get_tpu_info().vmem_capacity_bytes
        # 3/4 of physical VMEM, capped: v5e/v6e (128 MiB) -> 96 MiB, v7x (64) -> 48.
        kwargs["vmem_limit_bytes"] = min(phys * 3 // 4, 96 * 1024 * 1024)
    except Exception:
        pass  # fall back to the compiler's default scoped-VMEM limit
    return pltpu.CompilerParams(**kwargs)


def conv_layer_forward(x, weight, bias, gamma, beta):
    """x: [B, L, C]. weight: [C, C, 3] (out, in, k). bias/gamma/beta: [C].

    `bias` is accepted for API parity with the PyTorch module but unused: with
    train-mode BatchNorm batch statistics it is exactly cancelled by the mean.
    """
    del bias
    B, L, C = x.shape
    L_out = (L - 1) // 2 + 1
    L_pad = 2 * L_out

    x_bf = x.astype(jnp.bfloat16)   # bf16 MXU operands; halves pass-1 input DMA/VMEM
    # w[k, ci, co] = weight[co, ci, k]
    w = jnp.stack([weight[:, :, k].T for k in range(3)], axis=0).astype(jnp.bfloat16)

    # ---- pass 1: circular conv + per-batch partial BN stats (batch axis parallel) ----
    y, psum, psq = pl.pallas_call(
        conv_stats_kernel,
        out_shape=(jax.ShapeDtypeStruct((B, L_pad, C), jnp.bfloat16),
                   jax.ShapeDtypeStruct((B, 1, C), jnp.float32),
                   jax.ShapeDtypeStruct((B, 1, C), jnp.float32)),
        grid_spec=pltpu.PrefetchScalarGridSpec(
            num_scalar_prefetch=0,
            grid=(B,),
            in_specs=[
                pl.BlockSpec((1, L, C), lambda b: (b, 0, 0)),
                pl.BlockSpec((3, C, C), lambda b: (0, 0, 0)),   # constant weight block
            ],
            out_specs=[
                pl.BlockSpec((1, L_pad, C), lambda b: (b, 0, 0)),
                pl.BlockSpec((1, 1, C), lambda b: (b, 0, 0)),   # per-batch partial sum
                pl.BlockSpec((1, 1, C), lambda b: (b, 0, 0)),   # per-batch partial sumsq
            ]),
        compiler_params=_compiler_params(("parallel",)),        # megacore-shardable
    )(x_bf, w)

    # ---- glue: fold BN statistics + affine into per-channel scale / shift ----
    # Single-pass (biased) variance in f32; max(.,0) guards cancellation.
    count = jnp.float32(B * L)
    ysum = jnp.sum(psum, axis=(0, 1))                            # [C]
    ysq = jnp.sum(psq, axis=(0, 1))                              # [C]
    mean = ysum / count
    var = jnp.maximum(ysq / count - mean * mean, 0.0)
    inv = lax.rsqrt(var + jnp.float32(BN_EPS))
    scale = gamma.astype(jnp.float32) * inv
    shift = beta.astype(jnp.float32) - mean * scale
    scale2 = jnp.tile(scale, 2).reshape(1, 2 * C)                # lanes: [y[2j] | y[2j+1]]
    shift2 = jnp.tile(shift, 2).reshape(1, 2 * C)

    # Free (contiguous) reshape: row j of y2 = [y[2j] | y[2j+1]] along the lane axis,
    # so the stride-2 pool selection is two lane slices (no strided/gather loads).
    y2 = y.reshape(B, L_out, 2 * C)

    # ---- pass 2: fused BN affine + ELU + MaxPool (batch axis independent) ----
    kernel2 = functools.partial(bn_elu_pool_kernel, odd_length=(L % 2 == 1))
    out = pl.pallas_call(
        kernel2,
        out_shape=jax.ShapeDtypeStruct((B, L_out, C), jnp.float32),
        grid_spec=pltpu.PrefetchScalarGridSpec(
            num_scalar_prefetch=0,
            grid=(B,),
            in_specs=[
                pl.BlockSpec((1, L_out, 2 * C), lambda b: (b, 0, 0)),
                pl.BlockSpec((1, 2 * C), lambda b: (0, 0)),
                pl.BlockSpec((1, 2 * C), lambda b: (0, 0)),
            ],
            out_specs=pl.BlockSpec((1, L_out, C), lambda b: (b, 0, 0))),
        compiler_params=_compiler_params(("parallel",)),
    )(y2, scale2, shift2)
    return out


# ---------------------------------------------------------------------------
# Pure-JAX reference mirroring the PyTorch module (train-mode BatchNorm, with bias)
# ---------------------------------------------------------------------------
def ref_forward(x, weight, bias, gamma, beta):
    xt = jnp.transpose(x, (0, 2, 1))                                       # [B, C, L]
    xpad = jnp.concatenate([xt[:, :, -1:], xt, xt[:, :, :1]], axis=-1)     # circular pad=1
    y = lax.conv_general_dilated(
        xpad, weight, window_strides=(1,), padding="VALID",
        dimension_numbers=("NCH", "OIH", "NCH"), precision=lax.Precision.HIGHEST)
    y = y + bias[None, :, None]
    mean = jnp.mean(y, axis=(0, 2), keepdims=True)
    var = jnp.mean((y - mean) ** 2, axis=(0, 2), keepdims=True)
    y = (y - mean) / jnp.sqrt(var + BN_EPS) * gamma[None, :, None] + beta[None, :, None]
    y = jnp.where(y > 0, y, jnp.exp(jnp.minimum(y, 0.0)) - 1.0)
    L = y.shape[-1]
    L_out = (L - 1) // 2 + 1
    ypad = jnp.pad(y, ((0, 0), (0, 0), (1, 1)), constant_values=jnp.float32(_NEG))
    wins = jnp.stack([ypad[:, :, 2 * j:2 * j + 3] for j in range(L_out)], axis=2)
    out = jnp.max(wins, axis=-1)                                            # [B, C, L_out]
    return jnp.transpose(out, (0, 2, 1))                                    # [B, L_out, C]


if __name__ == "__main__":
    key = jax.random.PRNGKey(0)
    kx, kw, kb, kg, kbe = jax.random.split(key, 5)
    B, L, C = 2, 16, 8                                  # c_in = 8, seq len 16

    x = jax.random.normal(kx, (B, L, C), jnp.float32)
    conv_weight = 0.3 * jax.random.normal(kw, (C, C, 3), jnp.float32)   # [out, in, k]
    conv_bias = 0.1 * jax.random.normal(kb, (C,), jnp.float32)
    bn_gamma = 1.0 + 0.1 * jax.random.normal(kg, (C,), jnp.float32)
    bn_beta = 0.1 * jax.random.normal(kbe, (C,), jnp.float32)

    out = conv_layer_forward(x, conv_weight, conv_bias, bn_gamma, bn_beta)
    out = jax.block_until_ready(out)

    ref = ref_forward(x, conv_weight, conv_bias, bn_gamma, bn_beta)
    assert out.shape == (B, (L - 1) // 2 + 1, C), out.shape
    # Tolerance 4e-2: bf16 input/weight MXU operands (f32 accumulation) and a bf16
    # intermediate y vs the all-f32 HIGHEST-precision reference.
    assert jnp.allclose(out, ref, rtol=4e-2, atol=4e-2), (
        "max abs err = %g" % float(jnp.max(jnp.abs(out - ref))))
    print("KERNEL_OK")
</pallas_src>

<mosaic_0001>
module attributes {stable_mosaic.version = 11 : i64} {
  func.func @conv_stats_kernel(%arg0: i32, %arg1: memref<1x16x8xbf16, #tpu.memory_space<vmem>>, %arg2: memref<3x8x8xbf16, #tpu.memory_space<vmem>>, %arg3: memref<1x16x8xbf16, #tpu.memory_space<vmem>>, %arg4: memref<1x1x8xf32, #tpu.memory_space<vmem>>, %arg5: memref<1x1x8xf32, #tpu.memory_space<vmem>>) attributes {dimension_semantics = [#tpu.dimension_semantics<parallel>], iteration_bounds = array<i64: 2>, scalar_prefetch = 0 : i64, scratch_operands = 0 : i64, tpu.core_type = #tpu.core_type<tc>, window_params = [{transform_indices = @transform_0, window_bounds = array<i64: 1, 16, 8>}, {pipeline_mode = #tpu.pipeline_mode<synchronous>, transform_indices = @transform_1, window_bounds = array<i64: 3, 8, 8>}, {transform_indices = @transform_2, window_bounds = array<i64: 1, 16, 8>}, {transform_indices = @transform_3, window_bounds = array<i64: 1, 1, 8>}, {transform_indices = @transform_4, window_bounds = array<i64: 1, 1, 8>}]} {
    %c0 = arith.constant 0 : index
    %c0_0 = arith.constant 0 : index
    %c0_1 = arith.constant 0 : index
    %0 = vector.load %arg1[%c0, %c0_0, %c0_1] : memref<1x16x8xbf16, #tpu.memory_space<vmem>>, vector<1x16x8xbf16>
    %1 = vector.shape_cast %0 : vector<1x16x8xbf16> to vector<16x8xbf16>
    %2 = vector.extract_strided_slice %1 {offsets = [15, 0], sizes = [1, 8], strides = [1, 1]} : vector<16x8xbf16> to vector<1x8xbf16>
    %3 = vector.extract_strided_slice %1 {offsets = [0, 0], sizes = [15, 8], strides = [1, 1]} : vector<16x8xbf16> to vector<15x8xbf16>
    %4 = tpu.concatenate %2, %3 in 0 : vector<1x8xbf16>, vector<15x8xbf16> -> vector<16x8xbf16>
    %5 = vector.extract_strided_slice %1 {offsets = [1, 0], sizes = [15, 8], strides = [1, 1]} : vector<16x8xbf16> to vector<15x8xbf16>
    %6 = vector.extract_strided_slice %1 {offsets = [0, 0], sizes = [1, 8], strides = [1, 1]} : vector<16x8xbf16> to vector<1x8xbf16>
    %7 = tpu.concatenate %5, %6 in 0 : vector<15x8xbf16>, vector<1x8xbf16> -> vector<16x8xbf16>
    %c0_2 = arith.constant 0 : index
    %c0_3 = arith.constant 0 : index
    %c0_4 = arith.constant 0 : index
    %8 = vector.load %arg2[%c0_2, %c0_3, %c0_4] : memref<3x8x8xbf16, #tpu.memory_space<vmem>>, vector<1x8x8xbf16>
    %9 = vector.shape_cast %8 : vector<1x8x8xbf16> to vector<8x8xbf16>
    %cst = arith.constant dense<0.000000e+00> : vector<16x8xf32>
    %10 = tpu.matmul %4, %9, %cst {dimension_numbers = #tpu.dot_dimension_numbers<[1], [0], [0], [1], [0, 0, 1, 1], [], []>} : vector<16x8xbf16>, vector<8x8xbf16>, vector<16x8xf32> -> vector<16x8xf32>
    %c1 = arith.constant 1 : index
    %c0_5 = arith.constant 0 : index
    %c0_6 = arith.constant 0 : index
    %11 = vector.load %arg2[%c1, %c0_5, %c0_6] : memref<3x8x8xbf16, #tpu.memory_space<vmem>>, vector<1x8x8xbf16>
    %12 = vector.shape_cast %11 : vector<1x8x8xbf16> to vector<8x8xbf16>
    %cst_7 = arith.constant dense<0.000000e+00> : vector<16x8xf32>
    %13 = tpu.matmul %1, %12, %cst_7 {dimension_numbers = #tpu.dot_dimension_numbers<[1], [0], [0], [1], [0, 0, 1, 1], [], []>} : vector<16x8xbf16>, vector<8x8xbf16>, vector<16x8xf32> -> vector<16x8xf32>
    %14 = arith.addf %10, %13 : vector<16x8xf32>
    %c2 = arith.constant 2 : index
    %c0_8 = arith.constant 0 : index
    %c0_9 = arith.constant 0 : index
    %15 = vector.load %arg2[%c2, %c0_8, %c0_9] : memref<3x8x8xbf16, #tpu.memory_space<vmem>>, vector<1x8x8xbf16>
    %16 = vector.shape_cast %15 : vector<1x8x8xbf16> to vector<8x8xbf16>
    %cst_10 = arith.constant dense<0.000000e+00> : vector<16x8xf32>
    %17 = tpu.matmul %7, %16, %cst_10 {dimension_numbers = #tpu.dot_dimension_numbers<[1], [0], [0], [1], [0, 0, 1, 1], [], []>} : vector<16x8xbf16>, vector<8x8xbf16>, vector<16x8xf32> -> vector<16x8xf32>
    %18 = arith.addf %14, %17 : vector<16x8xf32>
    %cst_11 = arith.constant dense<0.000000e+00> : vector<8xf32>
    %19 = vector.multi_reduction <add>, %18, %cst_11 [0] : vector<16x8xf32> to vector<8xf32>
    %20 = vector.shape_cast %19 : vector<8xf32> to vector<1x8xf32>
    %c0_12 = arith.constant 0 : index
    %c0_13 = arith.constant 0 : index
    %c0_14 = arith.constant 0 : index
    %21 = vector.load %arg4[%c0_12, %c0_13, %c0_14] : memref<1x1x8xf32, #tpu.memory_space<vmem>>, vector<1x1x8xf32>
    %22 = vector.shape_cast %21 : vector<1x1x8xf32> to vector<1x8xf32>
    %23 = vector.shape_cast %20 : vector<1x8xf32> to vector<1x1x8xf32>
    tpu.vector_store %arg4[%c0_12, %c0_13, %c0_14], %23 {strides = array<i32>} : memref<1x1x8xf32, #tpu.memory_space<vmem>>, vector<1x1x8xf32>,
    %24 = arith.mulf %18, %18 : vector<16x8xf32>
    %cst_15 = arith.constant dense<0.000000e+00> : vector<8xf32>
    %25 = vector.multi_reduction <add>, %24, %cst_15 [0] : vector<16x8xf32> to vector<8xf32>
    %26 = vector.shape_cast %25 : vector<8xf32> to vector<1x8xf32>
    %c0_16 = arith.constant 0 : index
    %c0_17 = arith.constant 0 : index
    %c0_18 = arith.constant 0 : index
    %27 = vector.load %arg5[%c0_16, %c0_17, %c0_18] : memref<1x1x8xf32, #tpu.memory_space<vmem>>, vector<1x1x8xf32>
    %28 = vector.shape_cast %27 : vector<1x1x8xf32> to vector<1x8xf32>
    %29 = vector.shape_cast %26 : vector<1x8xf32> to vector<1x1x8xf32>
    tpu.vector_store %arg5[%c0_16, %c0_17, %c0_18], %29 {strides = array<i32>} : memref<1x1x8xf32, #tpu.memory_space<vmem>>, vector<1x1x8xf32>,
    %30 = arith.truncf %18 : vector<16x8xf32> to vector<16x8xbf16>
    %c0_19 = arith.constant 0 : index
    %c0_20 = arith.constant 0 : index
    %c0_21 = arith.constant 0 : index
    %31 = vector.load %arg3[%c0_19, %c0_20, %c0_21] : memref<1x16x8xbf16, #tpu.memory_space<vmem>>, vector<1x16x8xbf16>
    %32 = vector.shape_cast %31 : vector<1x16x8xbf16> to vector<16x8xbf16>
    %33 = vector.shape_cast %30 : vector<16x8xbf16> to vector<1x16x8xbf16>
    tpu.vector_store %arg3[%c0_19, %c0_20, %c0_21], %33 {strides = array<i32>} : memref<1x16x8xbf16, #tpu.memory_space<vmem>>, vector<1x16x8xbf16>,
    return
  }
  func.func @transform_0(%arg0: i32) -> (i32, i32, i32) {
    %c0_i32 = arith.constant 0 : i32
    %c0_i32_0 = arith.constant 0 : i32
    %c0_i32_1 = arith.constant 0 : i32
    return %arg0, %c0_i32, %c0_i32_0 : i32, i32, i32
  }
  func.func @transform_1(%arg0: i32) -> (i32, i32, i32) {
    %c0_i32 = arith.constant 0 : i32
    %c0_i32_0 = arith.constant 0 : i32
    %c0_i32_1 = arith.constant 0 : i32
    %c0_i32_2 = arith.constant 0 : i32
    return %c0_i32, %c0_i32_0, %c0_i32_1 : i32, i32, i32
  }
  func.func @transform_2(%arg0: i32) -> (i32, i32, i32) {
    %c0_i32 = arith.constant 0 : i32
    %c0_i32_0 = arith.constant 0 : i32
    %c0_i32_1 = arith.constant 0 : i32
    return %arg0, %c0_i32, %c0_i32_0 : i32, i32, i32
  }
  func.func @transform_3(%arg0: i32) -> (i32, i32, i32) {
    %c0_i32 = arith.constant 0 : i32
    %c0_i32_0 = arith.constant 0 : i32
    %c0_i32_1 = arith.constant 0 : i32
    return %arg0, %c0_i32, %c0_i32_0 : i32, i32, i32
  }
  func.func @transform_4(%arg0: i32) -> (i32, i32, i32) {
    %c0_i32 = arith.constant 0 : i32
    %c0_i32_0 = arith.constant 0 : i32
    %c0_i32_1 = arith.constant 0 : i32
    return %arg0, %c0_i32, %c0_i32_0 : i32, i32, i32
  }
}

</mosaic_0001>

<bundles_post_ra>
// kernel: tpu_custom_call.1
= control target key start
LH: loop header
LB: loop body
LE: loop exit
PB: predicated region body
PF: predicated region fallthrough
CT: control target
= control target key end

     0   :  { %10 = vsyncpa [#allocation3], 0  ;;  %s987_s0 = inlined_call_operand.vmem [shape: bf16[2,16,8], index: 0, kind: input, shape index: {}]   ;;  %s988_s1 = inlined_call_operand.vmem [shape: bf16[3,8,8], index: 1, kind: input, shape index: {}]   ;;  %s989_s2 = inlined_call_operand.vmem [shape: bf16[2,16,8], index: 2, kind: output, shape index: {0}]   ;;  %s990_s3 = inlined_call_operand.hbm [shape: f32[2,1,8], index: 3, kind: output, shape index: {1}]   ;;  %s991_s4 = inlined_call_operand.hbm [shape: f32[2,1,8], index: 4, kind: output, shape index: {2}]  }
   0x1   :  { %12 = vsyncpa [#allocation3 + $0x1], 0 }
   0x2   :  { %13 = vsyncpa [#allocation5], 0 }
   0x3   :  { %15 = vsyncpa [#allocation5 + $0x1], 0  ;;  %s815_s15 = smov 0   ;;  %s817_s16 = smov 0  }
   0x4   :  { %s819_s17 = smov 0   ;;  %s821_s18 = smov 0  }
   0x5 LB: > { %s836_s19 = sadd.s32 4294967295, %s784_s18   ;;  %s585_s20 = sadd.s32 4294967294, %s784_s18   ;;  %s784_s18 = sphi %s821_s18, %s997_s18   ;;  %s780_s17 = sphi %s819_s17, %s996_s17   ;;  %s776_s16 = sphi %s817_s16, %s995_s16   ;;  %s772_s15 = sphi %s815_s15, %s994_s15  }
   0x6   : > { %s840_s21 = sadd.s32 1, %s784_s18   ;;  %s101_s22 = sadd.s32 1, %s780_s17 }
   0x7   : > { %s98_s23 = ssub.s32 %s784_s18, %s840_s21  ;;  %p111_p0 = scmp.ne.s32.totalorder %s780_s17, %s776_s16 }
   0x8   : > { %p99_p1 = scmp.eq.s32.totalorder %s98_s23, 0  ;;  %p112_p2 = scmp.eq.s32.totalorder %s836_s19, 1 }
   0x9   : > { %p117_p3 = scmp.ne.s32.totalorder %s776_s16, %s772_s15  ;;  %p118_p4 = scmp.eq.s32.totalorder %s585_s20, 1 }
   0xa   : > { %s851_s24 = scalar_select %p99_p1, %s780_s17, %s101_s22  }
   0xb   : > { %p853_p5 = por %p112_p2, %p111_p0  ;;  %p857_p6 = por %p118_p4, %p117_p3 }
   0xc   : > { %p588_p7 = scmp.ge.s32.totalorder %s784_s18, 1  ;;  %p173_p8 = scmp.lt.s32.totalorder %s784_s18, 3 }
   0xe   : > { %p174_p9 = pnand %p588_p7, %p173_p8 }
   0xf   : > { %v256_v0 = vld [vmem:[%s988_s1] sm:$0xf] (!%p174_p9)  ;;  %vm262_vm0 = vcmask (!%p174_p9), 1043456   ;;  %p207_p10 = scmp.lt.s32.totalorder (!%p174_p9), %s836_s19, 1  ;;  %v786_v1 = vmov (!%p174_p9), 0.0   ;;  %vm787_vm1 = vmmov (!%p174_p9), 0  }
  0x10   : > { %177 = sbr.rel (%p174_p9) target bundleno = 317 (0x13d), region = 28  ;;  %623 = vmatprep.subr.bf16.mxu0 (!%p174_p9), %v786_v1  ;;  %v311_v2 = vsel (!%p174_p9), %vm262_vm0, %v256_v0, 0  ;;  %625 = vmatprep.mubr.msk.bf16.mxu0 (!%p174_p9), %vm787_vm1, %v786_v1  ;;  %v596_v3 = vld [vmem:[%s988_s1 + $0x4] sm:$0xf] (!%p174_p9)  ;;  %vm239_vm2 = vcmask (!%p174_p9), 1040384   ;;  %vm259_vm3 = vcmask (!%p174_p9), 64512  }
  0x11   : > { %624 = vmatpush3.bf16.msra.mxu0 (!%p174_p9), %v311_v2  ;;  %617 = vmatprep.subr.bf16.mxu1 (!%p174_p9), %v786_v1  ;;  %v264_v4 = vsel (!%p174_p9), %vm262_vm0, %v596_v3, 0  ;;  %vm240_vm4 = vsmask.f32 (!%p174_p9), 256  ;;  %v599_v14 = vld [vmem:[%s988_s1 + $0x8] sm:$0xf] (!%p174_p9)  ;;  %vm252_vm6 = vcmask (!%p174_p9), 1047552  }
  0x12   : > { %629 = vmatprep.subr.bf16.mxu0 (!%p174_p9), %v786_v1  ;;  %619 = vmatprep.mubr.msk.bf16.mxu1 (!%p174_p9), %vm787_vm1, %v786_v1  ;;  %vm241_vm5 = vmand (!%p174_p9), %vm239_vm2, %vm240_vm4  ;;  %v360_v17 = vsel (!%p174_p9), %vm262_vm0, %v599_v14, 0  ;;  %vm253_vm7 = vsmask.f32 (!%p174_p9), 7424  ;;  %vm436_vm9 = vcmask (!%p174_p9), 60416   ;;  %s901_s20 = sand.u32 (!%p174_p9), 1, %s776_s16   ;;  %s603_s22 = sshll.u32 (!%p174_p9), %s836_s19, 4 }
  0x13   : > { %618 = vmatpush3.bf16.msra.mxu1 (!%p174_p9), %v264_v4  ;;  %vm254_vm8 = vmand (!%p174_p9), %vm252_vm6, %vm253_vm7  ;;  %s200_s23 = scalar_lea.vmem (!%p174_p9), [#allocation2], %s901_s20  ;;  %vm414_vm10 = vcmask (!%p174_p9), 57344   ;;  %s206_s28 = scalar_lea.vmem (!%p174_p9), [#allocation4], %s901_s20 }
  0x14   : > { %s464_s27 = sshll.u32 (!%p174_p9), %s200_s23, 4  ;;  %s919_s8 = scalar_lea.hbm (!%p174_p9), %s991_s4, %s603_s22  ;;  %s913_s27 = int_to_ptr.vmem [resolvable:$true] %s464_s27 }
  0x15   : > { %s690_s10 = scalar_lea.vmem (!%p174_p9), %s913_s27, 16  ;;  %s788_s11 = smov (!%p174_p9), [#allocation2]  }
  0x16   : > { %p691_p11 = scmp.ne.s32.totalorder (!%p174_p9), %s913_s27, %s690_s10  ;;  %s694_s12 = sshll.u32 (!%p174_p9), %s788_s11, 4  ;;  %s695_s12 = int_to_ptr.vmem [resolvable:$false] %s694_s12 }
  0x17   : > { %s870_s29 = scalar_select %p207_p10, %s836_s19, 1 }
  0x18   : > { %p692_p12 = pnand %p691_p11, %p853_p5  ;;  %s696_s13 = scalar_lea.vmem %s695_s12, 32 }
  0x19   : > { %s607_s6 = sshll.u32 %s870_s29, 3  ;;  %s477_s29 = sshll.u32 %s206_s28, 4  ;;  %s921_s29 = int_to_ptr.vmem [resolvable:$true] %s477_s29 }
  0x1a   : > { %s211_s9 = scalar_lea.vmem %s987_s0, %s607_s6  ;;  %s216_s14 = scalar_lea.vmem %s989_s2, %s607_s6 }
  0x1b   : > { %v218_v5 = vld [vmem:[%s211_s9] sm:$0xf]  ;;  %v219_v6 = vld [vmem:[%s211_s9 + $0x4] sm:$0xf]  ;;  %s911_s6 = scalar_lea.hbm %s990_s3, %s603_s22  ;;  %s445_s9 = scalar_lea.sflag [#allocation3], %s901_s20 }
  0x1c   : > { %v593_v7 = vcombine.low %v219_v6, %v219_v6  ;;  %v594_v8 = vcombine.low %v218_v5, %v219_v6  ;;  %v595_v16 = vcombine.low %v218_v5, %v218_v5  ;;  %p693_p13 = pneg %p692_p12  ;;  %p697_p0 = scmp.lt.s32.totalorder %s913_s27, %s695_s12 }
  0x1d   : > { %p698_p1 = scmp.lt.s32.totalorder %s696_s13, %s690_s10 }
  0x1e   : > { %v224_v9 = vshrl.u32 %v593_v7, 16  ;;  %v232_v10 = vshrl.u32 %v594_v8, 16  ;;  %v235_v11 = vshll.u32 %v594_v8, 16  ;;  %620 = vmatmul.mubr.msk.bf16.vlgmr.msra.gmra.mrb[0].mxu1 %vm259_vm3, %v594_v8  ;;  %v248_v20 = vshll.u32 %v595_v16, 16 }
  0x1f   : > { %p699_p2 = por %p698_p1, %p697_p0 }
  0x20   : > { %v226_v12 = vrot.slane %v224_v9, 3  ;;  %v234_v13 = vrot.slane %v232_v10, 7  ;;  %v243_v19 = vrot.slane %v235_v11, 1  ;;  %v250_v22 = vrot.slane %v248_v20, 1 }
  0x21   : > { %p700_p3 = pnand %p699_p2, %p693_p13 }
  0x22   : > { %v237_v15 = vor.u32 %v235_v11, %v234_v13  ;;  %v244_v21 = vor.u32 %v243_v19, %v232_v10 }
  0x24   : > { %v242_v18 = vsel %vm241_vm5, %v226_v12, %v237_v15  ;;  %v255_v23 = vsel %vm254_vm8, %v244_v21, %v250_v22 }
  0x25   : > { %626 = vmatmul.mubr.msk.bf16.vlgmr.msra.gmra.mrb[0].mxu0 %vm259_vm3, %v242_v18 }
  0x26   : > { %630 = vmatpush3.bf16.msra.mxu0 %v360_v17  ;;  %631 = vmatprep.mubr.msk.bf16.mxu0 %vm787_vm1, %v786_v1 }
  0x31   : > { %632 = vmatmul.mubr.msk.bf16.vlgmr.msra.gmra.mrb[0].mxu0 %vm259_vm3, %v255_v23 }
  0xf1   : > { %v300_v24 = vpop.f32.mrb[0].mxu1 }
  0xf2   : > { %v621_v25 = vpop.f32.mrb[1].mxu1 }
  0xf3   : > { %v303_v26 = vpop.f32.mrb[2].mxu1 }
  0xf4   : > { %v622_v27 = vpop.f32.mrb[3].mxu1 }
 0x104   : > { %v396_v28 = vpop.f32.mrb[0].mxu0 }
 0x105   : > { %v635_v29 = vadd.f32 %v396_v28, %v300_v24  ;;  %v633_v30 = vpop.f32.mrb[1].mxu0 }
 0x106   : > { %v399_v31 = vpop.f32.mrb[2].mxu0 }
 0x107   : > { %v416_v32 = vmul.f32 %v635_v29, %v635_v29  ;;  %v609_v33 = vpack.c.bf16 %v635_v29, %v635_v29  ;;  %v636_v34 = vadd.f32 %v399_v31, %v303_v26  ;;  %v634_v35 = vpop.f32.mrb[3].mxu0  ;;  %v405_v36 = vsel %vm259_vm3, %v635_v29, 0.0 }
 0x109   : > { %437 = vst.msk [vmem:[%s216_s14] sm:$0xf] %vm436_vm9, %v609_v33  ;;  %v406_v37 = vsel %vm259_vm3, %v636_v34, 0.0  ;;  %v417_v38 = vmul.f32 %v636_v34, %v636_v34  ;;  %v610_v39 = vpack.c.bf16 %v636_v34, %v636_v34  ;;  %v418_v41 = vsel %vm259_vm3, %v416_v32, 0.0 }
 0x10a   : > { %v407_v40 = vadd.f32 %v406_v37, %v405_v36 }
 0x10b   : > { %v419_v42 = vsel %vm259_vm3, %v417_v38, 0.0  ;;  %438 = vst.msk [vmem:[%s216_s14 + $0x4] sm:$0xf] %vm436_vm9, %v610_v39 }
 0x10c   : > { %v408_v43 = vrot.slane %v407_v40, 4  ;;  %v420_v44 = vadd.f32 %v419_v42, %v418_v41 }
 0x10e   : > { %v409_v45 = vadd.f32 %v408_v43, %v407_v40  ;;  %v421_v46 = vrot.slane %v420_v44, 4 }
 0x110   : > { %v410_v47 = vrot.slane %v409_v45, 2  ;;  %v422_v48 = vadd.f32 %v421_v46, %v420_v44 }
 0x112   : > { %v411_v49 = vadd.f32 %v410_v47, %v409_v45  ;;  %v423_v50 = vrot.slane %v422_v48, 2 }
 0x114   : > { %v412_v51 = vrot.slane %v411_v49, 1  ;;  %v424_v52 = vadd.f32 %v423_v50, %v422_v48 }
 0x116   : > { %v413_v53 = vadd.f32 %v412_v51, %v411_v49  ;;  %v425_v54 = vrot.slane %v424_v52, 1 }
 0x118   : > { %415 = vst.msk [vmem:[%s200_s23] sm:$0x1] %vm414_vm10, %v413_v53  ;;  %v426_v55 = vadd.f32 %v425_v54, %v424_v52 }
 0x119   : > { %703 = shalt.err (!%p700_p3)
}
 0x11a   : > { %s704_s14 = scalar_lea.hbm %s911_s6, 16  ;;  %s708_s30 = scalar_lea.hbm %s990_s3, 32 }
 0x11b   : > { %p705_p4 = scmp.ne.s32.totalorder %s911_s6, %s704_s14  ;;  %p709_p9 = scmp.lt.u32.totalorder %s911_s6, %s990_s3 }
 0x11c   : > { %p710_p10 = scmp.lt.u32.totalorder %s708_s30, %s704_s14  ;;  %p712_p12 = scmp.lt.u32.totalorder %s704_s14, %s911_s6 }
 0x11d   : > { %p706_p7 = pnand %p705_p4, %p853_p5 }
 0x11e   : > { %p711_p11 = por %p710_p10, %p709_p9 }
 0x11f   : > { %p707_p8 = pneg %p706_p7 }
 0x120   : > { %p713_p13 = por %p712_p12, %p711_p11 }
 0x122   : > { %p714_p0 = pnand %p713_p13, %p707_p8 }
 0x124   : > { %717 = shalt.err (!%p714_p0)
}
 0x125   : > { %641 = dma.vmem_to_hbm [thread:$0]  (%p853_p5), %s913_s27, 16, %s911_s6, %s445_s9   ;;  %427 = vst.msk [vmem:[%s206_s28] sm:$0x1] %vm414_vm10, %v426_v55 }
 0x126   : > { %s449_s7 = scalar_lea.sflag [#allocation5], %s901_s20  ;;  %s718_s10 = scalar_lea.vmem %s921_s29, 16 }
 0x127   : > { %p719_p1 = scmp.ne.s32.totalorder %s921_s29, %s718_s10  ;;  %s789_s11 = smov [#allocation4]  }
 0x128   : > { %s722_s12 = sshll.u32 %s789_s11, 4  ;;  %s723_s12 = int_to_ptr.vmem [resolvable:$false] %s722_s12 }
 0x129   : > { %p720_p2 = pnand %p719_p1, %p853_p5  ;;  %s724_s13 = scalar_lea.vmem %s723_s12, 32 }
 0x12a   : > { %p725_p4 = scmp.lt.s32.totalorder %s921_s29, %s723_s12  ;;  %p726_p7 = scmp.lt.s32.totalorder %s724_s13, %s718_s10 }
 0x12b   : > { %p721_p3 = pneg %p720_p2 }
 0x12c   : > { %p727_p8 = por %p726_p7, %p725_p4 }
 0x12e   : > { %p728_p9 = pnand %p727_p8, %p721_p3 }
 0x130   : > { %731 = shalt.err (!%p728_p9)
}
 0x131   : > { %s732_s20 = scalar_lea.hbm %s919_s8, 16  ;;  %s736_s6 = scalar_lea.hbm %s991_s4, 32 }
 0x132   : > { %p733_p10 = scmp.ne.s32.totalorder %s919_s8, %s732_s20  ;;  %p737_p13 = scmp.lt.u32.totalorder %s919_s8, %s991_s4 }
 0x133   : > { %p738_p0 = scmp.lt.u32.totalorder %s736_s6, %s732_s20  ;;  %p740_p2 = scmp.lt.u32.totalorder %s732_s20, %s919_s8 }
 0x134   : > { %p734_p11 = pnand %p733_p10, %p853_p5 }
 0x135   : > { %p739_p1 = por %p738_p0, %p737_p13 }
 0x136   : > { %p735_p12 = pneg %p734_p11 }
 0x137   : > { %p741_p3 = por %p740_p2, %p739_p1 }
 0x139   : > { %p742_p4 = pnand %p741_p3, %p735_p12 }
 0x13b   : > { %745 = shalt.err (!%p742_p4)
}
 0x13c   : > { %642 = dma.vmem_to_hbm [thread:$0]  (%p853_p5), %s921_s29, 16, %s919_s8, %s449_s7  }
 0x13d PF: > { %p652_p7 = scmp.ge.s32.totalorder %s784_s18, 2  ;;  %s497_s22 = sand.u32 1, %s772_s15  }
 0x13e   : > { %s498_s23 = scalar_lea.sflag [#allocation3], %s497_s22 }
 0x13f   : > { %p646_p8 = pnand %p652_p7, %p857_p6 }
 0x141   : > { %763 = dma.done.wait (!%p646_p8), %s498_s23, 16  }
 0x142   : > { %765 = vsyncadd (!%p646_p8), %s498_s23, 4294967280  ;;  %s506_s30 = scalar_lea.sflag [#allocation5], %s497_s22 }
 0x143   : > { %767 = dma.done.wait (!%p646_p8), %s506_s30, 16  }
 0x144   : > { %769 = vsyncadd (!%p646_p8), %s506_s30, 4294967280  ;;  %p18_p5 = scmp.ge.s32.totalorder %s840_s21, 4   ;;  %s994_s15 = smov %s776_s16 }
 0x145   : > { %s995_s16 = smov %s780_s17  ;;  %s996_s17 = smov %s851_s24 }
 0x146   : > { %s997_s18 = smov %s840_s21  ;;  %20 = sbr.rel (!%p18_p5) target bundleno = 5 (0x5), region = 94 }
 0x14d   :  { %510 = vsyncpa [#allocation3], 1 }
 0x14e   :  { %512 = vsyncpa [#allocation3 + $0x1], 1 }
 0x14f   :  { %513 = vsyncpa [#allocation5], 1 }
 0x150   :  { %515 = vsyncpa [#allocation5 + $0x1], 1 }

</bundles_post_ra>
